<compile_context>
chip_gen: v6e
topology: v6e:2x2x1
jax: 0.10.0
libtpu: 0.0.40
codegen_flags: <defaults>
</compile_context>

<pallas_src>
import functools

import jax
import jax.numpy as jnp
from jax.experimental import pallas as pl
from jax.experimental.pallas import tpu as pltpu

_LANE = 128


def _loss_kernel(conf_ref, off_ref, gtoff_ref, inst_ref, out_ref,
                 *, bg_weight, num_classes):
    # Blocks (channel-major, flattened-HW lane-dense):
    #   conf_ref : (1, C, TS, 128)
    #   off_ref  : (1, 2, TS, 128)
    #   gtoff_ref: (1, 2, TS, 128)
    #   inst_ref : (1, 1, TS, 128)
    #   out_ref  : (1, 1, 8, 128)  rows 0/1/2 = conf-NLL row-sum / fg sq-err row-sum / fg count
    inst = inst_ref[0, 0]                                   # (TS, 128) int
    inst = jnp.clip(inst, 0, num_classes - 1)               # mirror take_along_axis clamping

    # gather(confidence, instance) over the small class dim: unrolled select loop,
    # in the input's NATIVE dtype; single cast to f32 before the log.
    conf0 = conf_ref[0, 0]
    gathered = jnp.where(inst == 0, conf0, jnp.zeros_like(conf0))
    for c in range(1, num_classes):
        gathered = jnp.where(inst == c, conf_ref[0, c], gathered)
    gathered = gathered.astype(jnp.float32)

    nll = -jnp.log(gathered)                                # (TS, 128), EUP
    is_bg = inst == 0
    weighted = jnp.where(is_bg, nll * bg_weight, nll)

    # offset loss pieces: squared error at foreground pixels + fg count
    dx = gtoff_ref[0, 0].astype(jnp.float32) - off_ref[0, 0].astype(jnp.float32)
    dy = gtoff_ref[0, 1].astype(jnp.float32) - off_ref[0, 1].astype(jnp.float32)
    sq = dx * dx + dy * dy                                  # (TS, 128)
    fg = jnp.logical_not(is_bg)

    # Reduce only along the sublane axis -> (128,)-wide partial rows (no XLU cross-lane
    # reduction in-kernel); lane + tile reduction finishes in the JAX epilogue.
    conf_row = jnp.sum(weighted, axis=0)                    # (128,)
    off_row = jnp.sum(jnp.where(fg, sq, 0.0), axis=0)       # (128,)
    cnt_row = jnp.sum(fg.astype(jnp.float32), axis=0)       # (128,)

    # Pack the three rows into one full (8, 128) tile -> single unmasked lane-dense store.
    rows = jax.lax.broadcasted_iota(jnp.int32, (8, _LANE), 0)
    tile = jnp.where(rows == 0, jnp.broadcast_to(conf_row[None, :], (8, _LANE)), 0.0)
    tile = jnp.where(rows == 1, jnp.broadcast_to(off_row[None, :], (8, _LANE)), tile)
    tile = jnp.where(rows == 2, jnp.broadcast_to(cnt_row[None, :], (8, _LANE)), tile)
    out_ref[0, 0] = tile


def _slab_budget_bytes():
    """Per-grid-step input-slab budget, generation aware (HBM-bound kernel)."""
    try:
        kind = jax.devices()[0].device_kind.lower()
    except Exception:  # pragma: no cover - defensive
        kind = ""
    if "v7" in kind:
        return 8 * 1024 * 1024
    if "v6" in kind:
        return 6 * 1024 * 1024
    if "v5" in kind:
        return 3 * 1024 * 1024
    return 4 * 1024 * 1024


def _pick_tile(num_rows, per_row_bytes, budget_bytes, batch):
    """Sublane tile TS: multiple of 8, per-step slab <= budget, and (when the image is
    large enough) at least ceil(4/B) tiles so v7x's two TensorCores both get grid work."""
    full = max(8, ((num_rows + 7) // 8) * 8)
    cap = max(8, (budget_bytes // max(per_row_bytes, 1)) // 8 * 8)
    ts = min(full, cap)
    min_tiles = -(-4 // max(int(batch), 1))                 # ceil(4 / B)
    if min_tiles > 1 and full > 8 * min_tiles:
        want = max(8, ((-(-num_rows // min_tiles)) + 7) // 8 * 8)
        ts = min(ts, want)
    return ts


def _pad_chw(x, hw, hw_pad, s_pad, pad_value):
    """Reshape (B, C, H, W) -> (B, C, S_pad, 128), padding flattened-HW then rows.
    Padded pixels get `pad_value` so they contribute zero to every accumulator."""
    B, C = x.shape[0], x.shape[1]
    x = x.reshape(B, C, hw)
    if hw_pad != hw:
        x = jnp.pad(x, ((0, 0), (0, 0), (0, hw_pad - hw)), constant_values=pad_value)
    s = hw_pad // _LANE
    x = x.reshape(B, C, s, _LANE)
    if s_pad != s:
        x = jnp.pad(x, ((0, 0), (0, 0), (0, s_pad - s), (0, 0)),
                    constant_values=pad_value)
    return x


def loss_func_forward(confidence, offset, instance, gt_offset, coeff, bg_weight):
    """Replicates LossFunc.forward.

    Args (NCHW, like the PyTorch module):
      confidence: (B, C, H, W) float, positive (e.g. softmax probs).  bf16 is fine and
                  ~halves HBM traffic (the kernel casts in-VMEM).
      offset:     (B, 2, H, W) float (f32 or bf16)
      instance:   (B, 1, H, W) int class ids in [0, C) (int32 / int8 / uint8 all fine)
      gt_offset:  (B, 2, H, W) float (f32 or bf16)
    """
    B, C, H, W = confidence.shape
    HW = H * W

    # Always lane-dense: pad flattened HW to a multiple of 128.
    hw_pad = -(-HW // _LANE) * _LANE
    S = hw_pad // _LANE

    per_row_bytes = _LANE * (C * confidence.dtype.itemsize
                             + 2 * offset.dtype.itemsize
                             + 2 * gt_offset.dtype.itemsize
                             + instance.dtype.itemsize)
    TS = _pick_tile(S, per_row_bytes, _slab_budget_bytes(), B)
    num_tiles = -(-S // TS)
    S_pad = num_tiles * TS

    # Channel-major (native NCHW) layout: free reshapes, padding only when needed,
    # NO transposes, NO wrapper-side dtype casts.
    # Padded pixels: confidence=1.0 (-log(1)=0), instance=0 (background, not fg), offsets=0.
    conf = _pad_chw(confidence, HW, hw_pad, S_pad, 1.0)
    off = _pad_chw(offset, HW, hw_pad, S_pad, 0.0)
    gtoff = _pad_chw(gt_offset, HW, hw_pad, S_pad, 0.0)
    inst = _pad_chw(instance, HW, hw_pad, S_pad, 0)

    kernel = functools.partial(_loss_kernel, bg_weight=float(bg_weight), num_classes=C)

    slab_bytes = TS * per_row_bytes
    vmem_limit = int(min(56 * 1024 * 1024,
                         max(16 * 1024 * 1024, 2 * slab_bytes + 4 * 1024 * 1024)))

    cost = pl.CostEstimate(
        flops=int((3 * C + 12) * B * HW),
        transcendentals=int(B * HW),
        bytes_accessed=int(per_row_bytes * S_pad * B + B * num_tiles * 8 * _LANE * 4),
    )

    # TODO(synk): if a profile still shows exposed DMA at step boundaries, add
    # pipeline_mode=pl.Buffered(3) on the confidence BlockSpec only (largest stream).
    parts = pl.pallas_call(
        kernel,
        out_shape=jax.ShapeDtypeStruct((B, num_tiles, 8, _LANE), jnp.float32),
        grid_spec=pltpu.PrefetchScalarGridSpec(
            num_scalar_prefetch=0,
            grid=(B, num_tiles),
            in_specs=[
                pl.BlockSpec((1, C, TS, _LANE), lambda b, t: (b, 0, t, 0)),
                pl.BlockSpec((1, 2, TS, _LANE), lambda b, t: (b, 0, t, 0)),
                pl.BlockSpec((1, 2, TS, _LANE), lambda b, t: (b, 0, t, 0)),
                pl.BlockSpec((1, 1, TS, _LANE), lambda b, t: (b, 0, t, 0)),
            ],
            out_specs=pl.BlockSpec((1, 1, 8, _LANE), lambda b, t: (b, t, 0, 0)),
        ),
        compiler_params=pltpu.CompilerParams(
            dimension_semantics=("parallel", "parallel"),
            vmem_limit_bytes=vmem_limit),
        cost_estimate=cost,
    )(conf, off, gtoff, inst)

    # Tiny epilogue reductions (lane axis + tile axis) in plain JAX.
    conf_sums = jnp.sum(parts[:, :, 0, :], axis=(1, 2))      # (B,)
    off_sums = jnp.sum(parts[:, :, 1, :], axis=(1, 2))       # (B,)
    counts = jnp.sum(parts[:, :, 2, :], axis=(1, 2))         # (B,)

    # confidence loss: mean over the ORIGINAL B*H*W pixels (padded pixels contribute 0)
    conf_loss = jnp.sum(conf_sums) / (B * HW)

    # offset loss: per-batch mean over foreground pixels (empty batches skipped), / B
    per_batch = jnp.where(counts > 0,
                          off_sums / jnp.maximum(counts, 1.0),
                          jnp.zeros_like(off_sums))
    off_loss = jnp.sum(per_batch) / B

    return conf_loss * coeff[0] + off_loss * coeff[1]


def _reference(confidence, offset, instance, gt_offset, coeff, bg_weight):
    # pure-JAX reference mirroring the PyTorch code
    B, C, H, W = confidence.shape
    conf = jnp.transpose(confidence, (0, 2, 3, 1))            # (B,H,W,C)
    off = jnp.transpose(offset, (0, 2, 3, 1))                 # (B,H,W,2)
    gtoff = jnp.transpose(gt_offset, (0, 2, 3, 1))            # (B,H,W,2)
    inst = jnp.transpose(instance, (0, 2, 3, 1))              # (B,H,W,1)

    gathered = jnp.take_along_axis(conf, inst.astype(jnp.int32), axis=3)  # (B,H,W,1)
    nll = -jnp.log(gathered)
    nll = jnp.where(inst == 0, nll * bg_weight, nll)
    conf_loss = jnp.mean(nll)

    mask = (inst[..., 0] != 0)                                # (B,H,W)
    sq = jnp.sum((gtoff - off) ** 2, axis=-1)                 # (B,H,W)
    num = jnp.sum(jnp.where(mask, sq, 0.0), axis=(1, 2))      # (B,)
    cnt = jnp.sum(mask, axis=(1, 2)).astype(jnp.float32)      # (B,)
    per_batch = jnp.where(cnt > 0, num / jnp.maximum(cnt, 1.0), 0.0)
    off_loss = jnp.sum(per_batch) / B

    return conf_loss * coeff[0] + off_loss * coeff[1]


if __name__ == "__main__":
    # deterministic "opt" hyper-parameters (from LossFunc.__init__)
    coeff = (1.0, 0.5)
    bg_weight = 0.4

    B, C, H, W = 2, 4, 16, 16
    key = jax.random.PRNGKey(0)
    k1, k2, k3, k4 = jax.random.split(key, 4)

    # confidence: positive probabilities (softmax over class dim), NCHW
    logits = jax.random.normal(k1, (B, C, H, W), dtype=jnp.float32)
    confidence = jax.nn.softmax(logits, axis=1)
    offset = jax.random.normal(k2, (B, 2, H, W), dtype=jnp.float32)
    gt_offset = jax.random.normal(k3, (B, 2, H, W), dtype=jnp.float32)
    instance = jax.random.randint(k4, (B, 1, H, W), 0, C, dtype=jnp.int32)

    total = loss_func_forward(confidence, offset, instance, gt_offset, coeff, bg_weight)
    total = jax.block_until_ready(total)

    ref = _reference(confidence, offset, instance, gt_offset, coeff, bg_weight)
    assert jnp.allclose(total, ref, rtol=1e-5, atol=1e-5), (total, ref)

    print("KERNEL_OK")
</pallas_src>

<mosaic_0001>
module attributes {stable_mosaic.version = 11 : i64} {
  func.func @_loss_kernel(%arg0: i32, %arg1: i32, %arg2: memref<1x4x8x128xf32, #tpu.memory_space<vmem>>, %arg3: memref<1x2x8x128xf32, #tpu.memory_space<vmem>>, %arg4: memref<1x2x8x128xf32, #tpu.memory_space<vmem>>, %arg5: memref<1x1x8x128xi32, #tpu.memory_space<vmem>>, %arg6: memref<1x1x8x128xf32, #tpu.memory_space<vmem>>) attributes {dimension_semantics = [#tpu.dimension_semantics<parallel>, #tpu.dimension_semantics<parallel>], iteration_bounds = array<i64: 2, 1>, scalar_prefetch = 0 : i64, scratch_operands = 0 : i64, tpu.core_type = #tpu.core_type<tc>, window_params = [{transform_indices = @transform_0, window_bounds = array<i64: 1, 4, 8, 128>}, {transform_indices = @transform_1, window_bounds = array<i64: 1, 2, 8, 128>}, {transform_indices = @transform_2, window_bounds = array<i64: 1, 2, 8, 128>}, {transform_indices = @transform_3, window_bounds = array<i64: 1, 1, 8, 128>}, {transform_indices = @transform_4, window_bounds = array<i64: 1, 1, 8, 128>}]} {
    %c0 = arith.constant 0 : index
    %c0_0 = arith.constant 0 : index
    %c0_1 = arith.constant 0 : index
    %c0_2 = arith.constant 0 : index
    %0 = vector.load %arg5[%c0, %c0_0, %c0_1, %c0_2] : memref<1x1x8x128xi32, #tpu.memory_space<vmem>>, vector<1x1x8x128xi32>
    %1 = vector.shape_cast %0 : vector<1x1x8x128xi32> to vector<8x128xi32>
    %c0_i32 = arith.constant 0 : i32
    %c3_i32 = arith.constant 3 : i32
    %2 = vector.broadcast %c0_i32 : i32 to vector<8x128xi32>
    %3 = arith.maxsi %2, %1 : vector<8x128xi32>
    %4 = vector.broadcast %c3_i32 : i32 to vector<8x128xi32>
    %5 = arith.minsi %4, %3 : vector<8x128xi32>
    %c0_3 = arith.constant 0 : index
    %c0_4 = arith.constant 0 : index
    %c0_5 = arith.constant 0 : index
    %c0_6 = arith.constant 0 : index
    %6 = vector.load %arg2[%c0_3, %c0_4, %c0_5, %c0_6] : memref<1x4x8x128xf32, #tpu.memory_space<vmem>>, vector<1x1x8x128xf32>
    %7 = vector.shape_cast %6 : vector<1x1x8x128xf32> to vector<8x128xf32>
    %c0_i32_7 = arith.constant 0 : i32
    %8 = vector.broadcast %c0_i32_7 : i32 to vector<8x128xi32>
    %9 = arith.cmpi eq, %5, %8 : vector<8x128xi32>
    %cst = arith.constant 0.000000e+00 : f32
    %10 = vector.broadcast %cst : f32 to vector<8x128xf32>
    %11 = arith.select %9, %7, %10 : vector<8x128xi1>, vector<8x128xf32>
    %c1_i32 = arith.constant 1 : i32
    %12 = vector.broadcast %c1_i32 : i32 to vector<8x128xi32>
    %13 = arith.cmpi eq, %5, %12 : vector<8x128xi32>
    %c0_8 = arith.constant 0 : index
    %c1 = arith.constant 1 : index
    %c0_9 = arith.constant 0 : index
    %c0_10 = arith.constant 0 : index
    %14 = vector.load %arg2[%c0_8, %c1, %c0_9, %c0_10] : memref<1x4x8x128xf32, #tpu.memory_space<vmem>>, vector<1x1x8x128xf32>
    %15 = vector.shape_cast %14 : vector<1x1x8x128xf32> to vector<8x128xf32>
    %16 = arith.select %13, %15, %11 : vector<8x128xi1>, vector<8x128xf32>
    %c2_i32 = arith.constant 2 : i32
    %17 = vector.broadcast %c2_i32 : i32 to vector<8x128xi32>
    %18 = arith.cmpi eq, %5, %17 : vector<8x128xi32>
    %c0_11 = arith.constant 0 : index
    %c2 = arith.constant 2 : index
    %c0_12 = arith.constant 0 : index
    %c0_13 = arith.constant 0 : index
    %19 = vector.load %arg2[%c0_11, %c2, %c0_12, %c0_13] : memref<1x4x8x128xf32, #tpu.memory_space<vmem>>, vector<1x1x8x128xf32>
    %20 = vector.shape_cast %19 : vector<1x1x8x128xf32> to vector<8x128xf32>
    %21 = arith.select %18, %20, %16 : vector<8x128xi1>, vector<8x128xf32>
    %c3_i32_14 = arith.constant 3 : i32
    %22 = vector.broadcast %c3_i32_14 : i32 to vector<8x128xi32>
    %23 = arith.cmpi eq, %5, %22 : vector<8x128xi32>
    %c0_15 = arith.constant 0 : index
    %c3 = arith.constant 3 : index
    %c0_16 = arith.constant 0 : index
    %c0_17 = arith.constant 0 : index
    %24 = vector.load %arg2[%c0_15, %c3, %c0_16, %c0_17] : memref<1x4x8x128xf32, #tpu.memory_space<vmem>>, vector<1x1x8x128xf32>
    %25 = vector.shape_cast %24 : vector<1x1x8x128xf32> to vector<8x128xf32>
    %26 = arith.select %23, %25, %21 : vector<8x128xi1>, vector<8x128xf32>
    %27 = math.log %26 : vector<8x128xf32>
    %cst_18 = arith.constant 0.000000e+00 : f32
    %28 = vector.broadcast %cst_18 : f32 to vector<8x128xf32>
    %29 = arith.subf %28, %27 : vector<8x128xf32>
    %c0_i32_19 = arith.constant 0 : i32
    %30 = vector.broadcast %c0_i32_19 : i32 to vector<8x128xi32>
    %31 = arith.cmpi eq, %5, %30 : vector<8x128xi32>
    %cst_20 = arith.constant 4.000000e-01 : f32
    %32 = vector.broadcast %cst_20 : f32 to vector<8x128xf32>
    %33 = arith.mulf %29, %32 : vector<8x128xf32>
    %34 = arith.select %31, %33, %29 : vector<8x128xi1>, vector<8x128xf32>
    %c0_21 = arith.constant 0 : index
    %c0_22 = arith.constant 0 : index
    %c0_23 = arith.constant 0 : index
    %c0_24 = arith.constant 0 : index
    %35 = vector.load %arg4[%c0_21, %c0_22, %c0_23, %c0_24] : memref<1x2x8x128xf32, #tpu.memory_space<vmem>>, vector<1x1x8x128xf32>
    %36 = vector.shape_cast %35 : vector<1x1x8x128xf32> to vector<8x128xf32>
    %c0_25 = arith.constant 0 : index
    %c0_26 = arith.constant 0 : index
    %c0_27 = arith.constant 0 : index
    %c0_28 = arith.constant 0 : index
    %37 = vector.load %arg3[%c0_25, %c0_26, %c0_27, %c0_28] : memref<1x2x8x128xf32, #tpu.memory_space<vmem>>, vector<1x1x8x128xf32>
    %38 = vector.shape_cast %37 : vector<1x1x8x128xf32> to vector<8x128xf32>
    %39 = arith.subf %36, %38 : vector<8x128xf32>
    %c0_29 = arith.constant 0 : index
    %c1_30 = arith.constant 1 : index
    %c0_31 = arith.constant 0 : index
    %c0_32 = arith.constant 0 : index
    %40 = vector.load %arg4[%c0_29, %c1_30, %c0_31, %c0_32] : memref<1x2x8x128xf32, #tpu.memory_space<vmem>>, vector<1x1x8x128xf32>
    %41 = vector.shape_cast %40 : vector<1x1x8x128xf32> to vector<8x128xf32>
    %c0_33 = arith.constant 0 : index
    %c1_34 = arith.constant 1 : index
    %c0_35 = arith.constant 0 : index
    %c0_36 = arith.constant 0 : index
    %42 = vector.load %arg3[%c0_33, %c1_34, %c0_35, %c0_36] : memref<1x2x8x128xf32, #tpu.memory_space<vmem>>, vector<1x1x8x128xf32>
    %43 = vector.shape_cast %42 : vector<1x1x8x128xf32> to vector<8x128xf32>
    %44 = arith.subf %41, %43 : vector<8x128xf32>
    %45 = arith.mulf %39, %39 : vector<8x128xf32>
    %46 = arith.mulf %44, %44 : vector<8x128xf32>
    %47 = arith.addf %45, %46 : vector<8x128xf32>
    %cst_37 = arith.constant dense<true> : vector<8x128xi1>
    %48 = arith.xori %31, %cst_37 : vector<8x128xi1>
    %cst_38 = arith.constant dense<0.000000e+00> : vector<128xf32>
    %49 = vector.multi_reduction <add>, %34, %cst_38 [0] : vector<8x128xf32> to vector<128xf32>
    %cst_39 = arith.constant 0.000000e+00 : f32
    %50 = vector.broadcast %cst_39 : f32 to vector<8x128xf32>
    %51 = arith.select %48, %47, %50 : vector<8x128xi1>, vector<8x128xf32>
    %cst_40 = arith.constant dense<0.000000e+00> : vector<128xf32>
    %52 = vector.multi_reduction <add>, %51, %cst_40 [0] : vector<8x128xf32> to vector<128xf32>
    %53 = arith.extui %48 : vector<8x128xi1> to vector<8x128xi32>
    %54 = arith.sitofp %53 : vector<8x128xi32> to vector<8x128xf32>
    %cst_41 = arith.constant dense<0.000000e+00> : vector<128xf32>
    %55 = vector.multi_reduction <add>, %54, %cst_41 [0] : vector<8x128xf32> to vector<128xf32>
    %56 = tpu.iota {dimensions = array<i32: 0>} : vector<8x128xi32>
    %c0_i32_42 = arith.constant 0 : i32
    %57 = vector.broadcast %c0_i32_42 : i32 to vector<8x128xi32>
    %58 = arith.cmpi eq, %56, %57 : vector<8x128xi32>
    %59 = vector.shape_cast %49 : vector<128xf32> to vector<1x128xf32>
    %60 = vector.shape_cast %59 : vector<1x128xf32> to vector<1x128xf32>
    %61 = vector.broadcast %60 : vector<1x128xf32> to vector<8x128xf32>
    %cst_43 = arith.constant 0.000000e+00 : f32
    %62 = vector.broadcast %cst_43 : f32 to vector<8x128xf32>
    %63 = arith.select %58, %61, %62 : vector<8x128xi1>, vector<8x128xf32>
    %c1_i32_44 = arith.constant 1 : i32
    %64 = vector.broadcast %c1_i32_44 : i32 to vector<8x128xi32>
    %65 = arith.cmpi eq, %56, %64 : vector<8x128xi32>
    %66 = vector.shape_cast %52 : vector<128xf32> to vector<1x128xf32>
    %67 = vector.shape_cast %66 : vector<1x128xf32> to vector<1x128xf32>
    %68 = vector.broadcast %67 : vector<1x128xf32> to vector<8x128xf32>
    %69 = arith.select %65, %68, %63 : vector<8x128xi1>, vector<8x128xf32>
    %c2_i32_45 = arith.constant 2 : i32
    %70 = vector.broadcast %c2_i32_45 : i32 to vector<8x128xi32>
    %71 = arith.cmpi eq, %56, %70 : vector<8x128xi32>
    %72 = vector.shape_cast %55 : vector<128xf32> to vector<1x128xf32>
    %73 = vector.shape_cast %72 : vector<1x128xf32> to vector<1x128xf32>
    %74 = vector.broadcast %73 : vector<1x128xf32> to vector<8x128xf32>
    %75 = arith.select %71, %74, %69 : vector<8x128xi1>, vector<8x128xf32>
    %c0_46 = arith.constant 0 : index
    %c0_47 = arith.constant 0 : index
    %c0_48 = arith.constant 0 : index
    %c0_49 = arith.constant 0 : index
    %76 = vector.load %arg6[%c0_46, %c0_47, %c0_48, %c0_49] : memref<1x1x8x128xf32, #tpu.memory_space<vmem>>, vector<1x1x8x128xf32>
    %77 = vector.shape_cast %76 : vector<1x1x8x128xf32> to vector<8x128xf32>
    %78 = vector.shape_cast %75 : vector<8x128xf32> to vector<1x1x8x128xf32>
    tpu.vector_store %arg6[%c0_46, %c0_47, %c0_48, %c0_49], %78 {strides = array<i32>} : memref<1x1x8x128xf32, #tpu.memory_space<vmem>>, vector<1x1x8x128xf32>,
    return
  }
  func.func @transform_0(%arg0: i32, %arg1: i32) -> (i32, i32, i32, i32) {
    %c0_i32 = arith.constant 0 : i32
    %c0_i32_0 = arith.constant 0 : i32
    %c0_i32_1 = arith.constant 0 : i32
    return %arg0, %c0_i32, %arg1, %c0_i32_0 : i32, i32, i32, i32
  }
  func.func @transform_1(%arg0: i32, %arg1: i32) -> (i32, i32, i32, i32) {
    %c0_i32 = arith.constant 0 : i32
    %c0_i32_0 = arith.constant 0 : i32
    %c0_i32_1 = arith.constant 0 : i32
    return %arg0, %c0_i32, %arg1, %c0_i32_0 : i32, i32, i32, i32
  }
  func.func @transform_2(%arg0: i32, %arg1: i32) -> (i32, i32, i32, i32) {
    %c0_i32 = arith.constant 0 : i32
    %c0_i32_0 = arith.constant 0 : i32
    %c0_i32_1 = arith.constant 0 : i32
    return %arg0, %c0_i32, %arg1, %c0_i32_0 : i32, i32, i32, i32
  }
  func.func @transform_3(%arg0: i32, %arg1: i32) -> (i32, i32, i32, i32) {
    %c0_i32 = arith.constant 0 : i32
    %c0_i32_0 = arith.constant 0 : i32
    %c0_i32_1 = arith.constant 0 : i32
    return %arg0, %c0_i32, %arg1, %c0_i32_0 : i32, i32, i32, i32
  }
  func.func @transform_4(%arg0: i32, %arg1: i32) -> (i32, i32, i32, i32) {
    %c0_i32 = arith.constant 0 : i32
    %c0_i32_0 = arith.constant 0 : i32
    %c0_i32_1 = arith.constant 0 : i32
    return %arg0, %arg1, %c0_i32, %c0_i32_0 : i32, i32, i32, i32
  }
}

</mosaic_0001>

<bundles_post_ra>
// kernel: tpu_custom_call.1
= control target key start
LH: loop header
LB: loop body
LE: loop exit
PB: predicated region body
PF: predicated region fallthrough
CT: control target
= control target key end

     0   :  { %s1175_s0 = inlined_call_operand.hbm [shape: f32[2,4,8,128], index: 0, kind: input, shape index: {}]   ;;  %s1176_s1 = inlined_call_operand.hbm [shape: f32[2,2,8,128], index: 1, kind: input, shape index: {}]   ;;  %s1177_s2 = inlined_call_operand.hbm [shape: f32[2,2,8,128], index: 2, kind: input, shape index: {}]   ;;  %s1178_s3 = inlined_call_operand.hbm [shape: s32[2,1,8,128], index: 3, kind: input, shape index: {}]   ;;  %s1179_s4 = inlined_call_operand.hbm [shape: f32[2,1,8,128], index: 4, kind: output, shape index: {}]  }
   0x1   :  { %1186 = sst [smem:[#allocation18_spill]] %s1176_s1 }
   0x2   :  { %1187 = sst [smem:[#allocation19_spill]] %s1177_s2 }
   0x3   :  { %9 = vsyncpa [#allocation3], 0 }
   0x4   :  { %11 = vsyncpa [#allocation3 + $0x1], 0 }
   0x5   :  { %12 = vsyncpa [#allocation6], 0 }
   0x6   :  { %14 = vsyncpa [#allocation6 + $0x1], 0 }
   0x7   :  { %15 = vsyncpa [#allocation9], 0 }
   0x8   :  { %17 = vsyncpa [#allocation9 + $0x1], 0 }
   0x9   :  { %18 = vsyncpa [#allocation4], 0 }
   0xa   :  { %20 = vsyncpa [#allocation4 + $0x1], 0  ;;  %s943_s15 = smov 0   ;;  %s945_s16 = smov 0  }
   0xb   :  { %s947_s17 = smov 0   ;;  %s949_s18 = smov 0  }
   0xc   :  { %s951_s19 = smov 0   ;;  %s953_s20 = smov 0  }
   0xd LB: > { %1188 = sst [smem:[#allocation15_spill]] %s895_s17  ;;  %s974_s21 = sadd.s32 4294967295, %s907_s20   ;;  %s907_s20 = sphi %s953_s20, %s26_s20   ;;  %s903_s19 = sphi %s951_s19, %s1208_s19   ;;  %s899_s18 = sphi %s949_s18, %s1207_s18   ;;  %s895_s17 = sphi %s947_s17, %s1203_s17   ;;  %s891_s16 = sphi %s945_s16, %s1206_s16   ;;  %s887_s15 = sphi %s943_s15, %s1205_s15  }
   0xe   : > { %s591_s22 = sadd.s32 4294967294, %s907_s20   ;;  %s38_s23 = sadd.s32 1, %s903_s19 }
   0xf   : > { %s47_s24 = sadd.s32 1, %s895_s17  ;;  %p40_p0 = scmp.ge.s32.totalorder %s38_s23, 2 }
  0x10   : > { %p54_p1 = scmp.ne.s32.totalorder %s895_s17, %s891_s16  ;;  %p55_p2 = scmp.eq.s32.totalorder %s907_s20, 0 }
  0x11   : > { %p60_p3 = scmp.ne.s32.totalorder %s891_s16, %s887_s15  ;;  %s1210_s23 = smov (%p40_p0, %s38_s23), 0 }
  0x12   : > { %1189 = sst [smem:[#allocation16_spill]] %s1210_s23  ;;  %p986_p4 = por %p55_p2, %p54_p1 }
  0x13   : > { %p61_p5 = scmp.eq.s32.totalorder %s974_s21, 0  ;;  %s42_s26 = ssub.s32 %s903_s19, %s1210_s23 }
  0x14   : > { %p170_p6 = scmp.eq.s32.totalorder %s974_s21, 1  ;;  %p45_p7 = scmp.eq.s32.totalorder %s42_s26, 0 }
  0x15   : > { %p994_p8 = por %p61_p5, %p60_p3  ;;  %p176_p10 = scmp.eq.s32.totalorder %s591_s22, 1 }
  0x16   : > { %p998_p9 = por %p170_p6, %p54_p1  ;;  %p651_p13 = scmp.lt.s32.totalorder %s907_s20, 2 }
  0x17   : > { %s1003_s29 = scalar_select %p45_p7, %s895_s17, %s47_s24  }
  0x18   : > { %p1005_p11 = por %p176_p10, %p60_p3  ;;  %s1012_s5 = sand.u32 1, %s895_s17  }
  0x19   : > { %1193 = sst [smem:[#allocation17_spill]] %s1003_s29  ;;  %p1016_p0 = pnand %p651_p13, %p986_p4 }
  0x1a   : > { %s218_s7 = sand.u32 1, %s907_s20   ;;  %s597_s8 = sshll.u32 %s1012_s5, 4 }
  0x1b   : > { %s622_s9 = sshll.u32 %s903_s19, 8  ;;  %s222_s10 = scalar_lea.vmem [#allocation5], %s597_s8 }
  0x1c   : > { %s230_s11 = sshll.u32 %s222_s10, 4  ;;  %s1196_s1 = sld [smem:[#allocation18_spill]]  ;;  %s231_s11 = int_to_ptr.vmem [resolvable:$true] %s230_s11 }
  0x1d   : > { %s1026_s22 = scalar_lea.sflag [#allocation6], %s218_s7  ;;  %p709_p1 = pneg %p1016_p0 }
  0x1e   : > { %s720_s24 = scalar_lea.vmem %s231_s11, 256  ;;  %s909_s25 = smov [#allocation5]  }
  0x1f   : > { %p721_p2 = scmp.ne.s32.totalorder %s231_s11, %s720_s24  ;;  %s725_s26 = sshll.u32 %s909_s25, 4  ;;  %s726_s26 = int_to_ptr.vmem [resolvable:$false] %s725_s26 }
  0x20   : > { %s727_s23 = scalar_lea.vmem %s726_s26, 512  ;;  %p728_p5 = scmp.lt.s32.totalorder %s231_s11, %s726_s26 }
  0x21   : > { %p723_p3 = pnand %p721_p2, %p709_p1  ;;  %p729_p6 = scmp.lt.s32.totalorder %s727_s23, %s720_s24 }
  0x22   : > { %s229_s14 = scalar_lea.hbm %s1196_s1, %s622_s9 }
  0x23   : > { %p724_p4 = pneg %p723_p3  ;;  %p730_p7 = por %p729_p6, %p728_p5 }
  0x25   : > { %p731_p10 = pnand %p730_p7, %p724_p4 }
  0x27   : > { %734 = shalt.err (!%p731_p10)
}
  0x28   : > { %s1182_s10 = smov 128   ;;  %s1184_s7 = smov 8  }
  0x29   : > { %640 = dma.hbm_to_vmem [thread:$0]  (!%p1016_p0), %s229_s14, 256, %s231_s11, %s1026_s22, %s1182_s10, %s1182_s10, %s1184_s7  }
  0x2a   : > { %s1197_s2 = sld [smem:[#allocation19_spill]]  ;;  %s244_s24 = scalar_lea.vmem [#allocation7], %s597_s8 }
  0x2b   : > { %s252_s25 = sshll.u32 %s244_s24, 4  ;;  %p605_p13 = scmp.ge.s32.totalorder %s907_s20, 1  ;;  %s1045_s25 = int_to_ptr.vmem [resolvable:$true] %s252_s25 }
  0x2c   : > { %p279_p2 = scmp.lt.s32.totalorder %s907_s20, 3  ;;  %s594_s1 = sshll.u32 %s1012_s5, 5 }
  0x2d   : > { %s621_s29 = sshll.u32 %s903_s19, 9  ;;  %s200_s12 = scalar_lea.vmem [#allocation2], %s594_s1 }
  0x2e   : > { %p1048_p3 = pnand %p605_p13, %p279_p2  ;;  %s207_s14 = scalar_lea.hbm %s1175_s0, %s621_s29 }
  0x2f   : > { %s603_s8 = sshll.u32 %s1012_s5, 3  ;;  %s197_s23 = scalar_lea.sflag [#allocation3], %s1012_s5 }
  0x30   : > { %s1042_s13 = scalar_lea.hbm %s1197_s2, %s622_s9  ;;  %s208_s9 = sshll.u32 %s200_s12, 4  ;;  %s209_s9 = int_to_ptr.vmem [resolvable:$true] %s208_s9 }
  0x31   : > { %s748_s24 = scalar_lea.vmem %s209_s9, 512  ;;  %s912_s10 = smov [#allocation2]  }
  0x32   : > { %p749_p4 = scmp.ne.s32.totalorder %s209_s9, %s748_s24  ;;  %s753_s7 = sshll.u32 %s912_s10, 4  ;;  %s754_s7 = int_to_ptr.vmem [resolvable:$false] %s753_s7 }
  0x33   : > { %s755_s2 = scalar_lea.vmem %s754_s7, 1024  ;;  %p756_p7 = scmp.lt.s32.totalorder %s209_s9, %s754_s7 }
  0x34   : > { %p751_p5 = pnand %p749_p4, %p709_p1  ;;  %p757_p10 = scmp.lt.s32.totalorder %s755_s2, %s748_s24 }
  0x36   : > { %p752_p6 = pneg %p751_p5  ;;  %p758_p13 = por %p757_p10, %p756_p7 }
  0x38   : > { %p759_p2 = pnand %p758_p13, %p752_p6 }
  0x3a   : > { %762 = shalt.err (!%p759_p2)
}
  0x3b   : > { %s1199_s1 = smov 8   ;;  %s1200_s17 = smov 128  }
  0x3c   : > { %637 = dma.hbm_to_vmem [thread:$0]  (!%p1016_p0), %s207_s14, 512, %s209_s9, %s197_s23, %s1200_s17, %s1200_s17, %s1199_s1  }
  0x3d   : > { %s776_s29 = scalar_lea.vmem %s1045_s25, 256  ;;  %s913_s2 = smov [#allocation7]  }
  0x3e   : > { %p777_p4 = scmp.ne.s32.totalorder %s1045_s25, %s776_s29  ;;  %s781_s10 = sshll.u32 %s913_s2, 4  ;;  %s782_s10 = int_to_ptr.vmem [resolvable:$false] %s781_s10 }
  0x3f   : > { %s783_s7 = scalar_lea.vmem %s782_s10, 512  ;;  %p784_p6 = scmp.lt.s32.totalorder %s1045_s25, %s782_s10 }
  0x40   : > { %p779_p5 = pnand %p777_p4, %p709_p1  ;;  %p785_p7 = scmp.lt.s32.totalorder %s783_s7, %s776_s29 }
  0x42   : > { %p780_p12 = pneg %p779_p5  ;;  %p786_p10 = por %p785_p7, %p784_p6 }
  0x44   : > { %p787_p13 = pnand %p786_p10, %p780_p12 }
  0x46   : > { %790 = shalt.err (!%p787_p13)
}
  0x47   : > { %643 = dma.hbm_to_vmem [thread:$0]  (!%p1016_p0), %s1042_s13, 256, %s1045_s25, %s1026_s22, %s1200_s17, %s1200_s17, %s1199_s1  }
  0x48   : > { %s604_s11 = sshll.u32 %s903_s19, 7  ;;  %s266_s23 = scalar_lea.vmem [#allocation8], %s603_s8 }
  0x49   : > { %s272_s9 = scalar_lea.hbm %s1178_s3, %s604_s11  ;;  %s274_s24 = sshll.u32 %s266_s23, 4  ;;  %s275_s24 = int_to_ptr.vmem [resolvable:$true] %s274_s24 }
  0x4a   : > { %s263_s29 = scalar_lea.sflag [#allocation9], %s1012_s5  ;;  %s804_s2 = scalar_lea.vmem %s275_s24, 128 }
  0x4b   : > { %p805_p12 = scmp.ne.s32.totalorder %s275_s24, %s804_s2  ;;  %s914_s10 = smov [#allocation8]  }
  0x4c   : > { %s809_s7 = sshll.u32 %s914_s10, 4  ;;  %s810_s7 = int_to_ptr.vmem [resolvable:$false] %s809_s7 }
  0x4d   : > { %p807_p2 = pnand %p805_p12, %p709_p1  ;;  %s811_s22 = scalar_lea.vmem %s810_s7, 256 }
  0x4e   : > { %p812_p5 = scmp.lt.s32.totalorder %s275_s24, %s810_s7  ;;  %p813_p6 = scmp.lt.s32.totalorder %s811_s22, %s804_s2 }
  0x4f   : > { %p808_p4 = pneg %p807_p2 }
  0x50   : > { %p814_p7 = por %p813_p6, %p812_p5 }
  0x52   : > { %p815_p10 = pnand %p814_p7, %p808_p4 }
  0x54   : > { %818 = shalt.err (!%p815_p10)
}
  0x55   : > { %646 = dma.hbm_to_vmem [thread:$0]  (!%p1016_p0), %s272_s9, 128, %s275_s24, %s263_s29  }
  0x56   : > { %283 = sbr.rel (%p1048_p3) target bundleno = 157 (0x9d), region = 36  ;;  %s1096_s5 = sand.u32 (!%p1048_p3), 1, %s891_s16  }
  0x57   : > { %s606_s13 = sshll.u32 (!%p1048_p3), %s1096_s5, 5  ;;  %s286_s25 = scalar_lea.sflag (!%p1048_p3), [#allocation3], %s1096_s5 }
  0x58   : > { %s1100_s8 = scalar_lea.vmem (!%p1048_p3), [#allocation2], %s606_s13 }
  0x5b   : > { %870 = dma.done.wait (%p994_p8), %s286_s25, 512  }
  0x5c   : > { %872 = vsyncadd (%p994_p8), %s286_s25, 4294966784  ;;  %s294_s6 = sand.u32 1, %s974_s21   ;;  %s607_s26 = sshll.u32 %s1096_s5, 4 }
  0x5d   : > { %s295_s1 = scalar_lea.sflag [#allocation6], %s294_s6  ;;  %s298_s17 = scalar_lea.vmem [#allocation5], %s607_s26 }
  0x5e   : > { %874 = dma.done.wait (%p994_p8), %s295_s1, 512  }
  0x5f   : > { %876 = vsyncadd (%p994_p8), %s295_s1, 4294966784  ;;  %s609_s11 = sshll.u32 %s1096_s5, 3  ;;  %s307_s14 = scalar_lea.vmem [#allocation7], %s607_s26 }
  0x60   : > { %s313_s12 = scalar_lea.sflag [#allocation9], %s1096_s5  ;;  %s316_s9 = scalar_lea.vmem [#allocation8], %s609_s11 }
  0x61   : > { %878 = dma.done.wait (%p994_p8), %s313_s12, 128  }
  0x62   : > { %880 = vsyncadd (%p994_p8), %s313_s12, 4294967168  ;;  %v356_v0 = vld [vmem:[%s316_s9] sm:$0xff]  ;;  %v614_v4 = vld [vmem:[%s307_s14 + $0x8] sm:$0xff]  ;;  %vm915_vm6 = vmmov 1   ;;  %v916_v21 = vmov 0.0   ;;  %v414_v36 = vlaneseq  ;;  %s355_s21 = scalar_lea.vmem [#allocation10], %s609_s11 }
  0x63   : > { %vm357_vm0 = vcmp.gt.s32.totalorder %v356_v0, 0  ;;  %v381_v1 = vld [vmem:[%s307_s14] sm:$0xff]  ;;  %v615_v5 = vld [vmem:[%s298_s17 + $0x8] sm:$0xff]  ;;  %s438_s27 = sshll.u32 %s355_s21, 4  ;;  %s618_s23 = sshll.u32 %s899_s18, 7  ;;  %s1130_s27 = int_to_ptr.vmem [resolvable:$true] %s438_s27 }
  0x64   : > { %v358_v2 = vsel %vm357_vm0, %v356_v0, 0  ;;  %v382_v3 = vld [vmem:[%s298_s17] sm:$0xff]  ;;  %v611_v8 = vld [vmem:[%s1100_s8 + $0x8] sm:$0xff]  ;;  %v388_v11 = vsub.f32 %v614_v4, %v615_v5  ;;  %v613_v13 = vld [vmem:[%s1100_s8 + $0x18] sm:$0xff]  ;;  %v415_v41 = vshrl.u32 %v414_v36, 7  ;;  %s436_s2 = scalar_lea.hbm %s1179_s4, %s618_s23  ;;  %s424_s10 = scalar_lea.sflag [#allocation4], %s1096_s5 }
  0x65   : > { %vm359_vm1 = vcmp.lt.s32.totalorder %v358_v2, 3  ;;  %v361_v6 = vld [vmem:[%s1100_s8] sm:$0xff]  ;;  %v383_v9 = vsub.f32 %v381_v1, %v382_v3  ;;  %v612_v10 = vld [vmem:[%s1100_s8 + $0x10] sm:$0xff]  ;;  %s819_s7 = scalar_lea.vmem %s1130_s27, 128  ;;  %s917_s18 = smov [#allocation10]  }
  0x66   : > { %v360_v7 = vsel %vm359_vm1, %v358_v2, 3  ;;  %v390_v18 = vmul.f32 %v388_v11, %v388_v11  ;;  %vm416_vm8 = vcmp.eq.s32.totalorder %v415_v41, 0  ;;  %vm418_vm9 = vcmp.eq.s32.totalorder %v415_v41, 1  ;;  %p820_p8 = scmp.ne.s32.totalorder %s1130_s27, %s819_s7  ;;  %s823_s22 = sshll.u32 %s917_s18, 4  ;;  %s824_s22 = int_to_ptr.vmem [resolvable:$false] %s823_s22 }
  0x67   : > { %vm362_vm2 = vcmp.eq.s32.totalorder %v360_v7, 0  ;;  %vm364_vm3 = vcmp.eq.s32.totalorder %v360_v7, 1  ;;  %vm368_vm4 = vcmp.eq.s32.totalorder %v360_v7, 2  ;;  %vm372_vm5 = vcmp.eq.s32.totalorder %v360_v7, 3  ;;  %s825_s13 = scalar_lea.vmem %s824_s22, 256  ;;  %p826_p3 = scmp.lt.s32.totalorder %s1130_s27, %s824_s22 }
  0x68   : > { %v363_v12 = vsel %vm362_vm2, %v361_v6, 0.0  ;;  %v389_v17 = vmul.f32 %v383_v9, %v383_v9  ;;  %vm392_vm7 = vmxor %vm362_vm2, %vm915_vm6  ;;  %vm420_vm10 = vcmp.eq.s32.totalorder %v415_v41, 2  ;;  %p821_p0 = pnand %p820_p8, %p998_p9  ;;  %p827_p13 = scmp.lt.s32.totalorder %s825_s13, %s819_s7 }
  0x69   : > { %v367_v14 = vsel %vm364_vm3, %v611_v8, %v363_v12  ;;  %v616_v22 = vsel %vm392_vm7, 1.0, %v916_v21 }
  0x6a   : > { %v371_v15 = vsel %vm368_vm4, %v612_v10, %v367_v14  ;;  %v391_v19 = vadd.f32 %v390_v18, %v389_v17  ;;  %v408_v24 = vrot.slane %v616_v22, 4  ;;  %p822_p1 = pneg %p821_p0  ;;  %p828_p12 = por %p827_p13, %p826_p3 }
  0x6b   : > { %v375_v16 = vsel %vm372_vm5, %v613_v13, %v371_v15 }
  0x6c   : > { %705 = vlog2.f32 %v375_v16  ;;  %v399_v20 = vsel %vm392_vm7, %v391_v19, 0.0  ;;  %v409_v28 = vadd.f32 %v616_v22, %v408_v24  ;;  %p829_p2 = pnand %p828_p12, %p822_p1 }
  0x6d   : > { %v400_v23 = vrot.slane %v399_v20, 4 }
  0x6e   : > { %v410_v32 = vrot.slane %v409_v28, 2 }
  0x6f   : > { %v401_v27 = vadd.f32 %v400_v23, %v399_v20 }
  0x70   : > { %v411_v38 = vadd.f32 %v410_v32, %v409_v28 }
  0x71   : > { %v402_v31 = vrot.slane %v401_v27, 2 }
  0x72   : > { %v412_v43 = vrot.slane %v411_v38, 1 }
  0x73   : > { %v403_v35 = vadd.f32 %v402_v31, %v401_v27 }
  0x74   : > { %v413_v47 = vadd.f32 %v412_v43, %v411_v38 }
  0x75   : > { %v404_v40 = vrot.slane %v403_v35, 1 }
  0x77   : > { %v405_v45 = vadd.f32 %v404_v40, %v403_v35 }
  0x79   : > { %v706_v25 = vpop.eup %705 }
  0x7a   : > { %v377_v26 = vmul.f32 0.6931472, %v706_v25 }
  0x7c   : > { %v378_v29 = vsub.f32 0.0, %v377_v26 }
  0x7e   : > { %v379_v30 = vmul.f32 0.4, %v378_v29 }
  0x80   : > { %v380_v33 = vsel %vm362_vm2, %v379_v30, %v378_v29 }
  0x81   : > { %v393_v34 = vrot.slane %v380_v33, 4 }
  0x83   : > { %v394_v37 = vadd.f32 %v393_v34, %v380_v33 }
  0x85   : > { %v395_v39 = vrot.slane %v394_v37, 2 }
  0x87   : > { %v396_v42 = vadd.f32 %v395_v39, %v394_v37 }
  0x89   : > { %v397_v44 = vrot.slane %v396_v42, 1 }
  0x8b   : > { %v398_v46 = vadd.f32 %v397_v44, %v396_v42 }
  0x8d   : > { %v417_v48 = vsel %vm416_vm8, %v398_v46, 0.0 }
  0x8e   : > { %v419_v49 = vsel %vm418_vm9, %v405_v45, %v417_v48 }
  0x8f   : > { %v421_v50 = vsel %vm420_vm10, %v413_v47, %v419_v49 }
  0x90   : > { %422 = vst [vmem:[%s355_s21] sm:$0xff] %v421_v50 }
  0x91   : > { %832 = shalt.err (!%p829_p2)
}
  0x92   : > { %s833_s25 = scalar_lea.hbm %s436_s2, 128  ;;  %s837_s6 = scalar_lea.hbm %s1179_s4, 256 }
  0x93   : > { %p834_p4 = scmp.ne.s32.totalorder %s436_s2, %s833_s25  ;;  %p838_p7 = scmp.lt.s32.totalorder %s436_s2, %s1179_s4 }
  0x94   : > { %p839_p10 = scmp.lt.s32.totalorder %s837_s6, %s833_s25 }
  0x95   : > { %p835_p5 = pnand %p834_p4, %p998_p9 }
  0x96   : > { %p840_p8 = por %p839_p10, %p838_p7 }
  0x97   : > { %p836_p6 = pneg %p835_p5 }
  0x99   : > { %p841_p0 = pnand %p840_p8, %p836_p6 }
  0x9b   : > { %844 = shalt.err (!%p841_p0)
}
  0x9c   : > { %632 = dma.vmem_to_hbm [thread:$0]  (%p998_p9), %s1130_s27, 128, %s436_s2, %s424_s10  }
  0x9d PF: > { %s450_s17 = sand.u32 1, %s887_s15   ;;  %p1201_p1 = scmp.ge.s32.totalorder %s907_s20, 2 }
  0x9e   : > { %s451_s11 = scalar_lea.sflag [#allocation4], %s450_s17 }
  0x9f   : > { %p648_p3 = pnand %p1201_p1, %p1005_p11 }
  0xa1   : > { %p649_p13 = pneg %p648_p3 }
  0xa3   : > { %882 = dma.done.wait (%p649_p13), %s451_s11, 128  }
  0xa4   : > { %884 = vsyncadd (%p649_p13), %s451_s11, 4294967168  ;;  %s26_s20 = sadd.s32 1, %s907_s20   ;;  %s1202_s14 = sld [smem:[#allocation15_spill]] }
  0xa5   : > { %p23_p12 = scmp.ge.s32.totalorder %s26_s20, 4   ;;  %s1203_s17 = sld [smem:[#allocation17_spill]] }
  0xa6   : > { %s1204_s28 = sld [smem:[#allocation16_spill]]  ;;  %s1205_s15 = smov %s891_s16 }
  0xa7   : > { %s1207_s18 = smov %s903_s19 }
  0xa8   :  { %25 = sbr.rel (!%p23_p12) target bundleno = 13 (0xd), region = 123 }
  0xaa   : > { %s1206_s16 = smov %s1202_s14 }
  0xac   : > { %s1208_s19 = smov %s1204_s28 }
  0xad   :  { %456 = vsyncpa [#allocation3], 1 }
  0xae   :  { %458 = vsyncpa [#allocation3 + $0x1], 1 }
  0xaf   :  { %459 = vsyncpa [#allocation6], 1 }
  0xb0   :  { %461 = vsyncpa [#allocation6 + $0x1], 1 }
  0xb1   :  { %462 = vsyncpa [#allocation9], 1 }
  0xb2   :  { %464 = vsyncpa [#allocation9 + $0x1], 1 }
  0xb3   :  { %465 = vsyncpa [#allocation4], 1 }
  0xb4   :  { %467 = vsyncpa [#allocation4 + $0x1], 1 }

</bundles_post_ra>
